<compile_context>
chip_gen: v6e
topology: v6e:2x2x1
jax: 0.10.0
libtpu: 0.0.40
codegen_flags: <defaults>
</compile_context>

<pallas_src>
import functools

import jax
import jax.numpy as jnp
from jax.experimental import pallas as pl
from jax.experimental.pallas import tpu as pltpu


LANE = 128                       # pad unit: MXU / lane width
_VMEM_LIMIT = 32 * 1024 * 1024   # safe on v5e/v6e (128 MiB) and v7x (64 MiB physical)


def _round_up(x, m):
    return ((x + m - 1) // m) * m


def _pad2d(x, rows, cols):
    return jnp.pad(x, ((0, rows - x.shape[0]), (0, cols - x.shape[1])))


def _pick_tile(dim, cap):
    """Largest tile <= cap that divides dim (dim is a multiple of LANE)."""
    t = min(dim, cap)
    while dim % t:
        t -= LANE
    return t


def _itemsize(dt):
    return 2 if dt == jnp.bfloat16 else 4


@functools.lru_cache(maxsize=None)
def _mxu_out_tile():
    """256x256 output tiles feed v6e/v7x's 256-wide MXU; 128 on v4/v5-class chips."""
    try:
        info = pltpu.get_tpu_info()
        name = str(getattr(info, "chip_version", getattr(info, "chip_name", ""))).lower()
        if "v4" in name or "v5" in name:
            return 128
    except Exception:
        pass
    return 256


# --------------------------------------------------------------------------
# Tiled matmul kernel: P = X @ W  (bf16 operands, f32 accumulation)
# --------------------------------------------------------------------------
def _matmul_kernel(x_ref, w_ref, o_ref, acc_ref):
    @pl.when(pl.program_id(2) == 0)
    def _():
        acc_ref[...] = jnp.zeros_like(acc_ref)

    acc_ref[...] += jnp.dot(x_ref[...], w_ref[...],
                            preferred_element_type=jnp.float32)

    @pl.when(pl.program_id(2) == pl.num_programs(2) - 1)
    def _():
        o_ref[...] = acc_ref[...].astype(o_ref.dtype)


def matmul_tiled(x, w, *, m=None, out_dtype=jnp.bfloat16):
    """X @ W with X [M_full, K], W [K, N]; dims padded to LANE multiples.

    If `m` is given, only the first `m` rows of X are used (no copy of X is made;
    the row restriction happens purely through the grid / BlockSpec index_map).
    """
    m_full, K = x.shape
    _, N = w.shape
    M = m_full if m is None else m
    t_out = _mxu_out_tile()

    tm = _pick_tile(M, t_out)
    tn = _pick_tile(N, max(t_out, 512))   # single j step whenever N <= 512
    tk = _pick_tile(K, 2048)              # single k step for typical feature dims

    cost = pl.CostEstimate(
        flops=2 * M * N * K,
        transcendentals=0,
        bytes_accessed=M * K * 2 + K * N * 2 + M * N * _itemsize(out_dtype))

    return pl.pallas_call(
        _matmul_kernel,
        out_shape=jax.ShapeDtypeStruct((M, N), out_dtype),
        grid=(M // tm, N // tn, K // tk),
        in_specs=[pl.BlockSpec((tm, tk), lambda i, j, k: (i, k)),
                  pl.BlockSpec((tk, tn), lambda i, j, k: (k, j))],
        out_specs=pl.BlockSpec((tm, tn), lambda i, j, k: (i, j)),
        scratch_shapes=[pltpu.VMEM((tm, tn), jnp.float32)],
        compiler_params=pltpu.CompilerParams(
            dimension_semantics=("parallel", "parallel", "arbitrary"),
            vmem_limit_bytes=_VMEM_LIMIT),
        cost_estimate=cost,
    )(x, w)


# --------------------------------------------------------------------------
# Fused SAGE aggregation kernel:
#   out = A @ P + S, then per-feature scale/shift (+ReLU)
#   (S = H_self @ W_self is precomputed by matmul_tiled and just added here)
# --------------------------------------------------------------------------
def _sage_agg_kernel(a_ref, p_ref, s_ref, sc_ref, sh_ref, o_ref, acc_ref, *,
                     apply_relu):
    @pl.when(pl.program_id(2) == 0)
    def _():
        acc_ref[...] = jnp.zeros_like(acc_ref)

    # Mean aggregation of the already-projected neighbor slab (src-tile K loop).
    acc_ref[...] += jnp.dot(a_ref[...], p_ref[...],
                            preferred_element_type=jnp.float32)

    @pl.when(pl.program_id(2) == pl.num_programs(2) - 1)
    def _():
        # Add the hoisted self projection, then fused bias + eval-mode BN affine.
        out = (acc_ref[...] + s_ref[...]) * sc_ref[...] + sh_ref[...]
        if apply_relu:
            out = jnp.maximum(out, 0.0)  # ReLU activation
        o_ref[...] = out.astype(o_ref.dtype)


def sage_layer(a_p, h_p, prm, *, apply_bn_relu, out_dtype, eps=1e-5):
    """One SAGEConv('mean') layer [+ eval BatchNorm1d + ReLU].

    a_p : [nd_p, ns_p] bf16, zero-padded dense mean-aggregation matrix.
    h_p : [ns_p, fi_p] bf16, zero-padded activations (padded cols are exactly 0).
    Returns padded [nd_p, fo_p] activations in `out_dtype`.
    """
    nd_p, ns_p = a_p.shape
    fi_p = h_p.shape[1]
    f_out = prm["w_self"].shape[1]
    fo_p = _round_up(f_out, LANE)

    wn_p = _pad2d(prm["w_neigh"], fi_p, fo_p).astype(jnp.bfloat16)
    ws_p = _pad2d(prm["w_self"], fi_p, fo_p).astype(jnp.bfloat16)

    # Fold bias (+ eval-mode BN affine) into a per-feature scale/shift epilogue.
    # Zero padding of scale/shift keeps padded feature columns exactly 0 so that
    # padded bf16 activations can be fed straight into the next layer.
    if apply_bn_relu:
        inv = jax.lax.rsqrt(prm["running_var"] + eps)
        scale = prm["gamma"] * inv
        shift = prm["beta"] + (prm["bias"] - prm["running_mean"]) * scale
    else:
        scale = jnp.ones_like(prm["bias"])
        shift = prm["bias"]
    scale_p = _pad2d(scale.reshape(1, -1).astype(jnp.float32), 1, fo_p)
    shift_p = _pad2d(shift.reshape(1, -1).astype(jnp.float32), 1, fo_p)

    # Reassociated projection P = H @ W_neigh (invariant across dst tiles), and the
    # hoisted self projection S = H[:nd_p] @ W_self (dst = leading src rows; no copy).
    p = matmul_tiled(h_p, wn_p, out_dtype=jnp.bfloat16)            # [ns_p, fo_p]
    s = matmul_tiled(h_p, ws_p, m=nd_p, out_dtype=jnp.float32)     # [nd_p, fo_p]

    t_out = _mxu_out_tile()
    tm = _pick_tile(nd_p, t_out)
    tn = _pick_tile(fo_p, max(t_out, 512))   # tn = fo_p whenever fo_p <= 512 -> A read once
    tk = _pick_tile(ns_p, 2048)              # big K tiles: not per-step-overhead bound

    cost = pl.CostEstimate(
        flops=2 * nd_p * fo_p * ns_p,
        transcendentals=0,
        bytes_accessed=(nd_p * ns_p * 2 + ns_p * fo_p * 2 + nd_p * fo_p * 4
                        + nd_p * fo_p * _itemsize(out_dtype)))

    kernel = functools.partial(_sage_agg_kernel, apply_relu=apply_bn_relu)
    out = pl.pallas_call(
        kernel,
        out_shape=jax.ShapeDtypeStruct((nd_p, fo_p), out_dtype),
        grid=(nd_p // tm, fo_p // tn, ns_p // tk),
        in_specs=[pl.BlockSpec((tm, tk), lambda i, j, k: (i, k)),   # A tile
                  pl.BlockSpec((tk, tn), lambda i, j, k: (k, j)),   # P tile
                  pl.BlockSpec((tm, tn), lambda i, j, k: (i, j)),   # S tile (k-invariant)
                  pl.BlockSpec((1, tn), lambda i, j, k: (0, j)),    # scale
                  pl.BlockSpec((1, tn), lambda i, j, k: (0, j))],   # shift
        out_specs=pl.BlockSpec((tm, tn), lambda i, j, k: (i, j)),
        scratch_shapes=[pltpu.VMEM((tm, tn), jnp.float32)],
        compiler_params=pltpu.CompilerParams(
            dimension_semantics=("parallel", "parallel", "arbitrary"),
            vmem_limit_bytes=_VMEM_LIMIT),
        cost_estimate=cost,
    )(a_p, p, s, scale_p, shift_p)

    return out


def graphsage_forward(blocks, feat, params):
    """Eval-mode GraphSAGE forward (dropout = identity, BN uses running stats)."""
    n_layers = len(params)

    # Pad + cast activations once; keep them padded bf16 between layers.
    h_p = _pad2d(feat,
                 _round_up(feat.shape[0], LANE),
                 _round_up(feat.shape[1], LANE)).astype(jnp.bfloat16)

    for l, (a, prm) in enumerate(zip(blocks, params)):
        last = (l == n_layers - 1)
        n_dst, n_src = a.shape
        nd_p = _round_up(n_dst, LANE)
        ns_p = _round_up(n_src, LANE)

        # Pad + cast the dense aggregation matrix once per layer (bf16 MXU operand).
        # TODO(synk): in production, do this once at block-construction time.
        a_p = _pad2d(a, nd_p, ns_p).astype(jnp.bfloat16)

        # Keep H row-padding consistent with this block's padded src dim.
        if h_p.shape[0] < ns_p:
            h_p = jnp.pad(h_p, ((0, ns_p - h_p.shape[0]), (0, 0)))
        elif h_p.shape[0] > ns_p:
            h_p = h_p[:ns_p]

        out_dtype = jnp.float32 if last else jnp.bfloat16   # bf16 writeback mid-stack
        h_p = sage_layer(a_p, h_p, prm,
                         apply_bn_relu=not last, out_dtype=out_dtype)

    n_dst_last = blocks[-1].shape[0]
    n_classes = params[-1]["w_self"].shape[1]
    return h_p[:n_dst_last, :n_classes]


# --------------------------------------------------------------------------
# Pure-JAX f32 reference (for correctness check)
# --------------------------------------------------------------------------
def graphsage_reference(blocks, feat, params, eps=1e-5):
    h = feat
    n_layers = len(params)
    for l, prm in enumerate(params):
        a = blocks[l]
        n_dst = a.shape[0]
        h_neigh = a @ h
        out = h_neigh @ prm["w_neigh"] + h[:n_dst] @ prm["w_self"] + prm["bias"]
        if l != n_layers - 1:
            out = (out - prm["running_mean"]) * jax.lax.rsqrt(prm["running_var"] + eps)
            out = out * prm["gamma"] + prm["beta"]
            out = jnp.maximum(out, 0.0)
        h = out
    return h


# --------------------------------------------------------------------------
# Example inputs
# --------------------------------------------------------------------------
def _make_block(key, n_dst, n_src):
    """Dense mean-aggregation matrix [n_dst, n_src] with self-edges (example only)."""
    mask = jax.random.bernoulli(key, p=0.3, shape=(n_dst, n_src)).astype(jnp.float32)
    mask = mask.at[jnp.arange(n_dst), jnp.arange(n_dst)].set(1.0)
    deg = jnp.sum(mask, axis=1, keepdims=True)
    return mask / deg


def _init_params(key, in_feats, n_hidden, n_classes, n_layers):
    params = []
    for i in range(n_layers):
        in_h = in_feats if i == 0 else n_hidden
        out_h = n_classes if i == n_layers - 1 else n_hidden
        key, k1, k2 = jax.random.split(key, 3)
        scale = 1.0 / jnp.sqrt(jnp.float32(in_h))
        params.append({
            "w_neigh": jax.random.normal(k1, (in_h, out_h), jnp.float32) * scale,
            "w_self": jax.random.normal(k2, (in_h, out_h), jnp.float32) * scale,
            "bias": jnp.zeros((out_h,), jnp.float32),
            "gamma": jnp.ones((out_h,), jnp.float32),          # unused on last layer
            "beta": jnp.zeros((out_h,), jnp.float32),          # unused on last layer
            "running_mean": jnp.zeros((out_h,), jnp.float32),  # eval-mode BN stats
            "running_var": jnp.ones((out_h,), jnp.float32),
        })
    return params


if __name__ == "__main__":
    key = jax.random.PRNGKey(0)

    in_feats, n_hidden, n_classes, n_layers = 32, 64, 16, 2
    n_src = [48, 24]   # src nodes per block
    n_dst = [24, 16]   # dst nodes per block (dst_l == src_{l+1} prefix)

    key, kf, kb0, kb1 = jax.random.split(key, 4)
    feat = jax.random.normal(kf, (n_src[0], in_feats), jnp.float32)
    blocks = [_make_block(kb0, n_dst[0], n_src[0]),
              _make_block(kb1, n_dst[1], n_src[1])]

    params = _init_params(key, in_feats, n_hidden, n_classes, n_layers)

    fwd = jax.jit(graphsage_forward)
    out = jax.block_until_ready(fwd(blocks, feat, params))

    assert out.shape == (n_dst[-1], n_classes), out.shape
    ref = graphsage_reference(blocks, feat, params)
    max_err = float(jnp.max(jnp.abs(out - ref)))
    assert max_err < 5e-2, f"max abs error {max_err}"

    print("KERNEL_OK")
</pallas_src>

<mosaic_0001>
module attributes {stable_mosaic.version = 11 : i64} {
  func.func @_matmul_kernel(%arg0: i32, %arg1: i32, %arg2: i32, %arg3: memref<128x128xbf16, #tpu.memory_space<vmem>>, %arg4: memref<128x128xbf16, #tpu.memory_space<vmem>>, %arg5: memref<128x128xbf16, #tpu.memory_space<vmem>>, %arg6: memref<128x128xf32, #tpu.memory_space<vmem>>) attributes {dimension_semantics = [#tpu.dimension_semantics<parallel>, #tpu.dimension_semantics<parallel>, #tpu.dimension_semantics<arbitrary>], iteration_bounds = array<i64: 1, 1, 1>, scalar_prefetch = 0 : i64, scratch_operands = 1 : i64, tpu.core_type = #tpu.core_type<tc>, window_params = [{transform_indices = @transform_0, window_bounds = array<i64: 128, 128>}, {transform_indices = @transform_1, window_bounds = array<i64: 128, 128>}, {transform_indices = @transform_2, window_bounds = array<i64: 128, 128>}]} {
    %c0_i32 = arith.constant 0 : i32
    %0 = arith.cmpi eq, %arg2, %c0_i32 : i32
    %1 = arith.extui %0 : i1 to i32
    %c0_i32_0 = arith.constant 0 : i32
    %2 = arith.cmpi ne, %1, %c0_i32_0 : i32
    scf.if %2 {
      %cst_10 = arith.constant 0.000000e+00 : f32
      %12 = vector.broadcast %cst_10 : f32 to vector<128x128xf32>
      %c0_11 = arith.constant 0 : index
      %c0_12 = arith.constant 0 : index
      %13 = vector.load %arg6[%c0_11, %c0_12] : memref<128x128xf32, #tpu.memory_space<vmem>>, vector<128x128xf32>
      tpu.vector_store %arg6[%c0_11, %c0_12], %12 {strides = array<i32>} : memref<128x128xf32, #tpu.memory_space<vmem>>, vector<128x128xf32>,
    } else {
    }
    %c0 = arith.constant 0 : index
    %c0_1 = arith.constant 0 : index
    %3 = vector.load %arg6[%c0, %c0_1] : memref<128x128xf32, #tpu.memory_space<vmem>>, vector<128x128xf32>
    %c0_2 = arith.constant 0 : index
    %c0_3 = arith.constant 0 : index
    %4 = vector.load %arg3[%c0_2, %c0_3] : memref<128x128xbf16, #tpu.memory_space<vmem>>, vector<128x128xbf16>
    %c0_4 = arith.constant 0 : index
    %c0_5 = arith.constant 0 : index
    %5 = vector.load %arg4[%c0_4, %c0_5] : memref<128x128xbf16, #tpu.memory_space<vmem>>, vector<128x128xbf16>
    %cst = arith.constant dense<0.000000e+00> : vector<128x128xf32>
    %6 = tpu.matmul %4, %5, %cst {dimension_numbers = #tpu.dot_dimension_numbers<[1], [0], [0], [1], [0, 0, 1, 1], [], []>} : vector<128x128xbf16>, vector<128x128xbf16>, vector<128x128xf32> -> vector<128x128xf32>
    %7 = arith.addf %3, %6 : vector<128x128xf32>
    %c0_6 = arith.constant 0 : index
    %c0_7 = arith.constant 0 : index
    %8 = vector.load %arg6[%c0_6, %c0_7] : memref<128x128xf32, #tpu.memory_space<vmem>>, vector<128x128xf32>
    tpu.vector_store %arg6[%c0_6, %c0_7], %7 {strides = array<i32>} : memref<128x128xf32, #tpu.memory_space<vmem>>, vector<128x128xf32>,
    %c0_i32_8 = arith.constant 0 : i32
    %9 = arith.cmpi eq, %arg2, %c0_i32_8 : i32
    %10 = arith.extui %9 : i1 to i32
    %c0_i32_9 = arith.constant 0 : i32
    %11 = arith.cmpi ne, %10, %c0_i32_9 : i32
    scf.if %11 {
      %c0_10 = arith.constant 0 : index
      %c0_11 = arith.constant 0 : index
      %12 = vector.load %arg6[%c0_10, %c0_11] : memref<128x128xf32, #tpu.memory_space<vmem>>, vector<128x128xf32>
      %13 = arith.truncf %12 : vector<128x128xf32> to vector<128x128xbf16>
      %c0_12 = arith.constant 0 : index
      %c0_13 = arith.constant 0 : index
      %14 = vector.load %arg5[%c0_12, %c0_13] : memref<128x128xbf16, #tpu.memory_space<vmem>>, vector<128x128xbf16>
      tpu.vector_store %arg5[%c0_12, %c0_13], %13 {strides = array<i32>} : memref<128x128xbf16, #tpu.memory_space<vmem>>, vector<128x128xbf16>,
    } else {
    }
    return
  }
  func.func @transform_0(%arg0: i32, %arg1: i32, %arg2: i32) -> (i32, i32) {
    %c0_i32 = arith.constant 0 : i32
    return %arg0, %arg2 : i32, i32
  }
  func.func @transform_1(%arg0: i32, %arg1: i32, %arg2: i32) -> (i32, i32) {
    %c0_i32 = arith.constant 0 : i32
    return %arg2, %arg1 : i32, i32
  }
  func.func @transform_2(%arg0: i32, %arg1: i32, %arg2: i32) -> (i32, i32) {
    %c0_i32 = arith.constant 0 : i32
    return %arg0, %arg1 : i32, i32
  }
}

module attributes {stable_mosaic.version = 11 : i64} {
  func.func @_sage_agg_kernel(%arg0: i32, %arg1: i32, %arg2: i32, %arg3: memref<128x128xbf16, #tpu.memory_space<vmem>>, %arg4: memref<128x128xbf16, #tpu.memory_space<vmem>>, %arg5: memref<128x128xf32, #tpu.memory_space<vmem>>, %arg6: memref<1x128xf32, #tpu.memory_space<vmem>>, %arg7: memref<1x128xf32, #tpu.memory_space<vmem>>, %arg8: memref<128x128xbf16, #tpu.memory_space<vmem>>, %arg9: memref<128x128xf32, #tpu.memory_space<vmem>>) attributes {dimension_semantics = [#tpu.dimension_semantics<parallel>, #tpu.dimension_semantics<parallel>, #tpu.dimension_semantics<arbitrary>], iteration_bounds = array<i64: 1, 1, 1>, scalar_prefetch = 0 : i64, scratch_operands = 1 : i64, tpu.core_type = #tpu.core_type<tc>, window_params = [{transform_indices = @transform_0, window_bounds = array<i64: 128, 128>}, {transform_indices = @transform_1, window_bounds = array<i64: 128, 128>}, {transform_indices = @transform_2, window_bounds = array<i64: 128, 128>}, {transform_indices = @transform_3, window_bounds = array<i64: 1, 128>}, {transform_indices = @transform_4, window_bounds = array<i64: 1, 128>}, {transform_indices = @transform_5, window_bounds = array<i64: 128, 128>}]} {
    %c0_i32 = arith.constant 0 : i32
    %0 = arith.cmpi eq, %arg2, %c0_i32 : i32
    %1 = arith.extui %0 : i1 to i32
    %c0_i32_0 = arith.constant 0 : i32
    %2 = arith.cmpi ne, %1, %c0_i32_0 : i32
    scf.if %2 {
      %cst_10 = arith.constant 0.000000e+00 : f32
      %12 = vector.broadcast %cst_10 : f32 to vector<128x128xf32>
      %c0_11 = arith.constant 0 : index
      %c0_12 = arith.constant 0 : index
      %13 = vector.load %arg9[%c0_11, %c0_12] : memref<128x128xf32, #tpu.memory_space<vmem>>, vector<128x128xf32>
      tpu.vector_store %arg9[%c0_11, %c0_12], %12 {strides = array<i32>} : memref<128x128xf32, #tpu.memory_space<vmem>>, vector<128x128xf32>,
    } else {
    }
    %c0 = arith.constant 0 : index
    %c0_1 = arith.constant 0 : index
    %3 = vector.load %arg9[%c0, %c0_1] : memref<128x128xf32, #tpu.memory_space<vmem>>, vector<128x128xf32>
    %c0_2 = arith.constant 0 : index
    %c0_3 = arith.constant 0 : index
    %4 = vector.load %arg3[%c0_2, %c0_3] : memref<128x128xbf16, #tpu.memory_space<vmem>>, vector<128x128xbf16>
    %c0_4 = arith.constant 0 : index
    %c0_5 = arith.constant 0 : index
    %5 = vector.load %arg4[%c0_4, %c0_5] : memref<128x128xbf16, #tpu.memory_space<vmem>>, vector<128x128xbf16>
    %cst = arith.constant dense<0.000000e+00> : vector<128x128xf32>
    %6 = tpu.matmul %4, %5, %cst {dimension_numbers = #tpu.dot_dimension_numbers<[1], [0], [0], [1], [0, 0, 1, 1], [], []>} : vector<128x128xbf16>, vector<128x128xbf16>, vector<128x128xf32> -> vector<128x128xf32>
    %7 = arith.addf %3, %6 : vector<128x128xf32>
    %c0_6 = arith.constant 0 : index
    %c0_7 = arith.constant 0 : index
    %8 = vector.load %arg9[%c0_6, %c0_7] : memref<128x128xf32, #tpu.memory_space<vmem>>, vector<128x128xf32>
    tpu.vector_store %arg9[%c0_6, %c0_7], %7 {strides = array<i32>} : memref<128x128xf32, #tpu.memory_space<vmem>>, vector<128x128xf32>,
    %c0_i32_8 = arith.constant 0 : i32
    %9 = arith.cmpi eq, %arg2, %c0_i32_8 : i32
    %10 = arith.extui %9 : i1 to i32
    %c0_i32_9 = arith.constant 0 : i32
    %11 = arith.cmpi ne, %10, %c0_i32_9 : i32
    scf.if %11 {
      %c0_10 = arith.constant 0 : index
      %c0_11 = arith.constant 0 : index
      %12 = vector.load %arg9[%c0_10, %c0_11] : memref<128x128xf32, #tpu.memory_space<vmem>>, vector<128x128xf32>
      %c0_12 = arith.constant 0 : index
      %c0_13 = arith.constant 0 : index
      %13 = vector.load %arg5[%c0_12, %c0_13] : memref<128x128xf32, #tpu.memory_space<vmem>>, vector<128x128xf32>
      %14 = arith.addf %12, %13 : vector<128x128xf32>
      %c0_14 = arith.constant 0 : index
      %c0_15 = arith.constant 0 : index
      %15 = vector.load %arg6[%c0_14, %c0_15] : memref<1x128xf32, #tpu.memory_space<vmem>>, vector<1x128xf32>
      %16 = vector.broadcast %15 : vector<1x128xf32> to vector<128x128xf32>
      %17 = arith.mulf %14, %16 : vector<128x128xf32>
      %c0_16 = arith.constant 0 : index
      %c0_17 = arith.constant 0 : index
      %18 = vector.load %arg7[%c0_16, %c0_17] : memref<1x128xf32, #tpu.memory_space<vmem>>, vector<1x128xf32>
      %19 = vector.broadcast %18 : vector<1x128xf32> to vector<128x128xf32>
      %20 = arith.addf %17, %19 : vector<128x128xf32>
      %cst_18 = arith.constant 0.000000e+00 : f32
      %21 = vector.broadcast %cst_18 : f32 to vector<128x128xf32>
      %22 = arith.maximumf %20, %21 : vector<128x128xf32>
      %23 = arith.truncf %22 : vector<128x128xf32> to vector<128x128xbf16>
      %c0_19 = arith.constant 0 : index
      %c0_20 = arith.constant 0 : index
      %24 = vector.load %arg8[%c0_19, %c0_20] : memref<128x128xbf16, #tpu.memory_space<vmem>>, vector<128x128xbf16>
      tpu.vector_store %arg8[%c0_19, %c0_20], %23 {strides = array<i32>} : memref<128x128xbf16, #tpu.memory_space<vmem>>, vector<128x128xbf16>,
    } else {
    }
    return
  }
  func.func @transform_0(%arg0: i32, %arg1: i32, %arg2: i32) -> (i32, i32) {
    %c0_i32 = arith.constant 0 : i32
    return %arg0, %arg2 : i32, i32
  }
  func.func @transform_1(%arg0: i32, %arg1: i32, %arg2: i32) -> (i32, i32) {
    %c0_i32 = arith.constant 0 : i32
    return %arg2, %arg1 : i32, i32
  }
  func.func @transform_2(%arg0: i32, %arg1: i32, %arg2: i32) -> (i32, i32) {
    %c0_i32 = arith.constant 0 : i32
    return %arg0, %arg1 : i32, i32
  }
  func.func @transform_3(%arg0: i32, %arg1: i32, %arg2: i32) -> (i32, i32) {
    %c0_i32 = arith.constant 0 : i32
    %c0_i32_0 = arith.constant 0 : i32
    return %c0_i32, %arg1 : i32, i32
  }
  func.func @transform_4(%arg0: i32, %arg1: i32, %arg2: i32) -> (i32, i32) {
    %c0_i32 = arith.constant 0 : i32
    %c0_i32_0 = arith.constant 0 : i32
    return %c0_i32, %arg1 : i32, i32
  }
  func.func @transform_5(%arg0: i32, %arg1: i32, %arg2: i32) -> (i32, i32) {
    %c0_i32 = arith.constant 0 : i32
    return %arg0, %arg1 : i32, i32
  }
}

module attributes {stable_mosaic.version = 11 : i64} {
  func.func @_matmul_kernel(%arg0: i32, %arg1: i32, %arg2: i32, %arg3: memref<128x128xbf16, #tpu.memory_space<vmem>>, %arg4: memref<128x128xbf16, #tpu.memory_space<vmem>>, %arg5: memref<128x128xf32, #tpu.memory_space<vmem>>, %arg6: memref<128x128xf32, #tpu.memory_space<vmem>>) attributes {dimension_semantics = [#tpu.dimension_semantics<parallel>, #tpu.dimension_semantics<parallel>, #tpu.dimension_semantics<arbitrary>], iteration_bounds = array<i64: 1, 1, 1>, scalar_prefetch = 0 : i64, scratch_operands = 1 : i64, tpu.core_type = #tpu.core_type<tc>, window_params = [{transform_indices = @transform_0, window_bounds = array<i64: 128, 128>}, {transform_indices = @transform_1, window_bounds = array<i64: 128, 128>}, {transform_indices = @transform_2, window_bounds = array<i64: 128, 128>}]} {
    %c0_i32 = arith.constant 0 : i32
    %0 = arith.cmpi eq, %arg2, %c0_i32 : i32
    %1 = arith.extui %0 : i1 to i32
    %c0_i32_0 = arith.constant 0 : i32
    %2 = arith.cmpi ne, %1, %c0_i32_0 : i32
    scf.if %2 {
      %cst_10 = arith.constant 0.000000e+00 : f32
      %12 = vector.broadcast %cst_10 : f32 to vector<128x128xf32>
      %c0_11 = arith.constant 0 : index
      %c0_12 = arith.constant 0 : index
      %13 = vector.load %arg6[%c0_11, %c0_12] : memref<128x128xf32, #tpu.memory_space<vmem>>, vector<128x128xf32>
      tpu.vector_store %arg6[%c0_11, %c0_12], %12 {strides = array<i32>} : memref<128x128xf32, #tpu.memory_space<vmem>>, vector<128x128xf32>,
    } else {
    }
    %c0 = arith.constant 0 : index
    %c0_1 = arith.constant 0 : index
    %3 = vector.load %arg6[%c0, %c0_1] : memref<128x128xf32, #tpu.memory_space<vmem>>, vector<128x128xf32>
    %c0_2 = arith.constant 0 : index
    %c0_3 = arith.constant 0 : index
    %4 = vector.load %arg3[%c0_2, %c0_3] : memref<128x128xbf16, #tpu.memory_space<vmem>>, vector<128x128xbf16>
    %c0_4 = arith.constant 0 : index
    %c0_5 = arith.constant 0 : index
    %5 = vector.load %arg4[%c0_4, %c0_5] : memref<128x128xbf16, #tpu.memory_space<vmem>>, vector<128x128xbf16>
    %cst = arith.constant dense<0.000000e+00> : vector<128x128xf32>
    %6 = tpu.matmul %4, %5, %cst {dimension_numbers = #tpu.dot_dimension_numbers<[1], [0], [0], [1], [0, 0, 1, 1], [], []>} : vector<128x128xbf16>, vector<128x128xbf16>, vector<128x128xf32> -> vector<128x128xf32>
    %7 = arith.addf %3, %6 : vector<128x128xf32>
    %c0_6 = arith.constant 0 : index
    %c0_7 = arith.constant 0 : index
    %8 = vector.load %arg6[%c0_6, %c0_7] : memref<128x128xf32, #tpu.memory_space<vmem>>, vector<128x128xf32>
    tpu.vector_store %arg6[%c0_6, %c0_7], %7 {strides = array<i32>} : memref<128x128xf32, #tpu.memory_space<vmem>>, vector<128x128xf32>,
    %c0_i32_8 = arith.constant 0 : i32
    %9 = arith.cmpi eq, %arg2, %c0_i32_8 : i32
    %10 = arith.extui %9 : i1 to i32
    %c0_i32_9 = arith.constant 0 : i32
    %11 = arith.cmpi ne, %10, %c0_i32_9 : i32
    scf.if %11 {
      %c0_10 = arith.constant 0 : index
      %c0_11 = arith.constant 0 : index
      %12 = vector.load %arg6[%c0_10, %c0_11] : memref<128x128xf32, #tpu.memory_space<vmem>>, vector<128x128xf32>
      %c0_12 = arith.constant 0 : index
      %c0_13 = arith.constant 0 : index
      %13 = vector.load %arg5[%c0_12, %c0_13] : memref<128x128xf32, #tpu.memory_space<vmem>>, vector<128x128xf32>
      tpu.vector_store %arg5[%c0_12, %c0_13], %12 {strides = array<i32>} : memref<128x128xf32, #tpu.memory_space<vmem>>, vector<128x128xf32>,
    } else {
    }
    return
  }
  func.func @transform_0(%arg0: i32, %arg1: i32, %arg2: i32) -> (i32, i32) {
    %c0_i32 = arith.constant 0 : i32
    return %arg0, %arg2 : i32, i32
  }
  func.func @transform_1(%arg0: i32, %arg1: i32, %arg2: i32) -> (i32, i32) {
    %c0_i32 = arith.constant 0 : i32
    return %arg2, %arg1 : i32, i32
  }
  func.func @transform_2(%arg0: i32, %arg1: i32, %arg2: i32) -> (i32, i32) {
    %c0_i32 = arith.constant 0 : i32
    return %arg0, %arg1 : i32, i32
  }
}

module attributes {stable_mosaic.version = 11 : i64} {
  func.func @_sage_agg_kernel(%arg0: i32, %arg1: i32, %arg2: i32, %arg3: memref<128x128xbf16, #tpu.memory_space<vmem>>, %arg4: memref<128x128xbf16, #tpu.memory_space<vmem>>, %arg5: memref<128x128xf32, #tpu.memory_space<vmem>>, %arg6: memref<1x128xf32, #tpu.memory_space<vmem>>, %arg7: memref<1x128xf32, #tpu.memory_space<vmem>>, %arg8: memref<128x128xf32, #tpu.memory_space<vmem>>, %arg9: memref<128x128xf32, #tpu.memory_space<vmem>>) attributes {dimension_semantics = [#tpu.dimension_semantics<parallel>, #tpu.dimension_semantics<parallel>, #tpu.dimension_semantics<arbitrary>], iteration_bounds = array<i64: 1, 1, 1>, scalar_prefetch = 0 : i64, scratch_operands = 1 : i64, tpu.core_type = #tpu.core_type<tc>, window_params = [{transform_indices = @transform_0, window_bounds = array<i64: 128, 128>}, {transform_indices = @transform_1, window_bounds = array<i64: 128, 128>}, {transform_indices = @transform_2, window_bounds = array<i64: 128, 128>}, {transform_indices = @transform_3, window_bounds = array<i64: 1, 128>}, {transform_indices = @transform_4, window_bounds = array<i64: 1, 128>}, {transform_indices = @transform_5, window_bounds = array<i64: 128, 128>}]} {
    %c0_i32 = arith.constant 0 : i32
    %0 = arith.cmpi eq, %arg2, %c0_i32 : i32
    %1 = arith.extui %0 : i1 to i32
    %c0_i32_0 = arith.constant 0 : i32
    %2 = arith.cmpi ne, %1, %c0_i32_0 : i32
    scf.if %2 {
      %cst_10 = arith.constant 0.000000e+00 : f32
      %12 = vector.broadcast %cst_10 : f32 to vector<128x128xf32>
      %c0_11 = arith.constant 0 : index
      %c0_12 = arith.constant 0 : index
      %13 = vector.load %arg9[%c0_11, %c0_12] : memref<128x128xf32, #tpu.memory_space<vmem>>, vector<128x128xf32>
      tpu.vector_store %arg9[%c0_11, %c0_12], %12 {strides = array<i32>} : memref<128x128xf32, #tpu.memory_space<vmem>>, vector<128x128xf32>,
    } else {
    }
    %c0 = arith.constant 0 : index
    %c0_1 = arith.constant 0 : index
    %3 = vector.load %arg9[%c0, %c0_1] : memref<128x128xf32, #tpu.memory_space<vmem>>, vector<128x128xf32>
    %c0_2 = arith.constant 0 : index
    %c0_3 = arith.constant 0 : index
    %4 = vector.load %arg3[%c0_2, %c0_3] : memref<128x128xbf16, #tpu.memory_space<vmem>>, vector<128x128xbf16>
    %c0_4 = arith.constant 0 : index
    %c0_5 = arith.constant 0 : index
    %5 = vector.load %arg4[%c0_4, %c0_5] : memref<128x128xbf16, #tpu.memory_space<vmem>>, vector<128x128xbf16>
    %cst = arith.constant dense<0.000000e+00> : vector<128x128xf32>
    %6 = tpu.matmul %4, %5, %cst {dimension_numbers = #tpu.dot_dimension_numbers<[1], [0], [0], [1], [0, 0, 1, 1], [], []>} : vector<128x128xbf16>, vector<128x128xbf16>, vector<128x128xf32> -> vector<128x128xf32>
    %7 = arith.addf %3, %6 : vector<128x128xf32>
    %c0_6 = arith.constant 0 : index
    %c0_7 = arith.constant 0 : index
    %8 = vector.load %arg9[%c0_6, %c0_7] : memref<128x128xf32, #tpu.memory_space<vmem>>, vector<128x128xf32>
    tpu.vector_store %arg9[%c0_6, %c0_7], %7 {strides = array<i32>} : memref<128x128xf32, #tpu.memory_space<vmem>>, vector<128x128xf32>,
    %c0_i32_8 = arith.constant 0 : i32
    %9 = arith.cmpi eq, %arg2, %c0_i32_8 : i32
    %10 = arith.extui %9 : i1 to i32
    %c0_i32_9 = arith.constant 0 : i32
    %11 = arith.cmpi ne, %10, %c0_i32_9 : i32
    scf.if %11 {
      %c0_10 = arith.constant 0 : index
      %c0_11 = arith.constant 0 : index
      %12 = vector.load %arg9[%c0_10, %c0_11] : memref<128x128xf32, #tpu.memory_space<vmem>>, vector<128x128xf32>
      %c0_12 = arith.constant 0 : index
      %c0_13 = arith.constant 0 : index
      %13 = vector.load %arg5[%c0_12, %c0_13] : memref<128x128xf32, #tpu.memory_space<vmem>>, vector<128x128xf32>
      %14 = arith.addf %12, %13 : vector<128x128xf32>
      %c0_14 = arith.constant 0 : index
      %c0_15 = arith.constant 0 : index
      %15 = vector.load %arg6[%c0_14, %c0_15] : memref<1x128xf32, #tpu.memory_space<vmem>>, vector<1x128xf32>
      %16 = vector.broadcast %15 : vector<1x128xf32> to vector<128x128xf32>
      %17 = arith.mulf %14, %16 : vector<128x128xf32>
      %c0_16 = arith.constant 0 : index
      %c0_17 = arith.constant 0 : index
      %18 = vector.load %arg7[%c0_16, %c0_17] : memref<1x128xf32, #tpu.memory_space<vmem>>, vector<1x128xf32>
      %19 = vector.broadcast %18 : vector<1x128xf32> to vector<128x128xf32>
      %20 = arith.addf %17, %19 : vector<128x128xf32>
      %c0_18 = arith.constant 0 : index
      %c0_19 = arith.constant 0 : index
      %21 = vector.load %arg8[%c0_18, %c0_19] : memref<128x128xf32, #tpu.memory_space<vmem>>, vector<128x128xf32>
      tpu.vector_store %arg8[%c0_18, %c0_19], %20 {strides = array<i32>} : memref<128x128xf32, #tpu.memory_space<vmem>>, vector<128x128xf32>,
    } else {
    }
    return
  }
  func.func @transform_0(%arg0: i32, %arg1: i32, %arg2: i32) -> (i32, i32) {
    %c0_i32 = arith.constant 0 : i32
    return %arg0, %arg2 : i32, i32
  }
  func.func @transform_1(%arg0: i32, %arg1: i32, %arg2: i32) -> (i32, i32) {
    %c0_i32 = arith.constant 0 : i32
    return %arg2, %arg1 : i32, i32
  }
  func.func @transform_2(%arg0: i32, %arg1: i32, %arg2: i32) -> (i32, i32) {
    %c0_i32 = arith.constant 0 : i32
    return %arg0, %arg1 : i32, i32
  }
  func.func @transform_3(%arg0: i32, %arg1: i32, %arg2: i32) -> (i32, i32) {
    %c0_i32 = arith.constant 0 : i32
    %c0_i32_0 = arith.constant 0 : i32
    return %c0_i32, %arg1 : i32, i32
  }
  func.func @transform_4(%arg0: i32, %arg1: i32, %arg2: i32) -> (i32, i32) {
    %c0_i32 = arith.constant 0 : i32
    %c0_i32_0 = arith.constant 0 : i32
    return %c0_i32, %arg1 : i32, i32
  }
  func.func @transform_5(%arg0: i32, %arg1: i32, %arg2: i32) -> (i32, i32) {
    %c0_i32 = arith.constant 0 : i32
    return %arg0, %arg1 : i32, i32
  }
}

</mosaic_0001>

<bundles_post_ra>
// kernel: graphsage_forward.8
= control target key start
LH: loop header
LB: loop body
LE: loop exit
PB: predicated region body
PF: predicated region fallthrough
CT: control target
= control target key end

     0   :  { %s880_s1 = inlined_call_operand.vmem [shape: bf16[128,128], index: 1, kind: input, shape index: {}]   ;;  %s881_s0 = inlined_call_operand.vmem [shape: bf16[128,128], index: 0, kind: input, shape index: {}]   ;;  %s882_s2 = inlined_call_operand.vmem [shape: f32[128,128], index: 2, kind: input, shape index: {}]   ;;  %s883_s3 = inlined_call_operand.vmem [shape: f32[1,128], index: 3, kind: input, shape index: {}]   ;;  %s884_s4 = inlined_call_operand.vmem [shape: f32[1,128], index: 4, kind: input, shape index: {}]   ;;  %s885_s5 = inlined_call_operand.vmem [shape: bf16[128,128], index: 5, kind: output, shape index: {}]  }
   0x1   :  { %v672_v0 = vld [vmem:[%s880_s1 + $0x38] sm:$0xff]   ;;  %v673_v1 = vld [vmem:[%s880_s1 + $0x30] sm:$0xff]   ;;  %v674_v2 = vld [vmem:[%s880_s1 + $0x28] sm:$0xff]  }
   0x2   :  { %624 = vmatprep.subr.bf16.mxu0 %v672_v0  ;;  %656 = vmatprep.subr.bf16.mxu1 %v672_v0  ;;  %v675_v3 = vld [vmem:[%s880_s1 + $0x20] sm:$0xff]   ;;  %v676_v6 = vld [vmem:[%s880_s1 + $0x18] sm:$0xff]   ;;  %v677_v7 = vld [vmem:[%s880_s1 + $0x10] sm:$0xff]  }
   0x3   :  { %625 = vmatpush3.bf16.msra.mxu0 %v672_v0  ;;  %664 = vmatpush3.bf16.msra.mxu1 %v672_v0  ;;  %v680_v4 = vld [vmem:[%s881_s0] sm:$0xff]   ;;  %v678_v8 = vld [vmem:[%s880_s1 + $0x8] sm:$0xff]   ;;  %v684_v12 = vld [vmem:[%s881_s0 + $0x10] sm:$0xff]  }
   0x4   :  { %626 = vmatprep.subr.bf16.mxu0 %v673_v1  ;;  %657 = vmatprep.subr.bf16.mxu1 %v673_v1  ;;  %v681_v5 = vld [vmem:[%s881_s0 + $0x20] sm:$0xff]   ;;  %v682_v10 = vld [vmem:[%s881_s0 + $0x8] sm:$0xff]   ;;  %v685_v13 = vld [vmem:[%s881_s0 + $0x30] sm:$0xff]  }
   0x5   :  { %640 = vmatprep.mubr.bf16.mxu0 %v680_v4  ;;  %648 = vmatprep.mubr.bf16.mxu1 %v681_v5  ;;  %v679_v9 = vld [vmem:[%s880_s1] sm:$0xff]   ;;  %v683_v11 = vld [vmem:[%s881_s0 + $0x28] sm:$0xff]   ;;  %v686_v14 = vld [vmem:[%s881_s0 + $0x18] sm:$0xff]  }
   0x6   :  { %v687_v15 = vld [vmem:[%s881_s0 + $0x38] sm:$0xff]   ;;  %v335_v16 = vld [vmem:[%s882_s2 + $0x10] sm:$0xff]  ;;  %v775_v19 = vld [vmem:[%s883_s3] ss:$0 sm:$0xff] }
   0x7   :  { %627 = vmatpush3.bf16.msra.mxu0 %v673_v1  ;;  %665 = vmatpush3.bf16.msra.mxu1 %v673_v1  ;;  %v343_v17 = vld [vmem:[%s882_s2 + $0x50] sm:$0xff]  ;;  %v333_v21 = vld [vmem:[%s882_s2] sm:$0xff]  ;;  %v336_v31 = vld [vmem:[%s882_s2 + $0x18] sm:$0xff] }
   0x8   :  { %628 = vmatprep.subr.bf16.mxu0 %v674_v2  ;;  %658 = vmatprep.subr.bf16.mxu1 %v674_v2  ;;  %v341_v22 = vld [vmem:[%s882_s2 + $0x40] sm:$0xff]  ;;  %v344_v32 = vld [vmem:[%s882_s2 + $0x58] sm:$0xff]  ;;  %v334_v38 = vld [vmem:[%s882_s2 + $0x8] sm:$0xff] }
   0x9   :  { %v794_v33 = vld [vmem:[%s884_s4] ss:$0 sm:$0xff]  ;;  %v342_v39 = vld [vmem:[%s882_s2 + $0x48] sm:$0xff]  ;;  %v339_v44 = vld [vmem:[%s882_s2 + $0x30] sm:$0xff] }
   0xa   :  { %v347_v45 = vld [vmem:[%s882_s2 + $0x70] sm:$0xff]  ;;  %v337_v54 = vld [vmem:[%s882_s2 + $0x20] sm:$0xff] }
   0xb   :  { %629 = vmatpush3.bf16.msra.mxu0 %v674_v2  ;;  %666 = vmatpush3.bf16.msra.mxu1 %v674_v2  ;;  %v345_v55 = vld [vmem:[%s882_s2 + $0x60] sm:$0xff] }
   0xc   :  { %630 = vmatprep.subr.bf16.mxu0 %v675_v3  ;;  %659 = vmatprep.subr.bf16.mxu1 %v675_v3 }
   0xf   :  { %631 = vmatpush3.bf16.msra.mxu0 %v675_v3  ;;  %667 = vmatpush3.bf16.msra.mxu1 %v675_v3 }
  0x10   :  { %632 = vmatprep.subr.bf16.mxu0 %v676_v6  ;;  %660 = vmatprep.subr.bf16.mxu1 %v676_v6 }
  0x13   :  { %633 = vmatpush3.bf16.msra.mxu0 %v676_v6  ;;  %668 = vmatpush3.bf16.msra.mxu1 %v676_v6 }
  0x14   :  { %634 = vmatprep.subr.bf16.mxu0 %v677_v7  ;;  %661 = vmatprep.subr.bf16.mxu1 %v677_v7 }
  0x17   :  { %635 = vmatpush3.bf16.msra.mxu0 %v677_v7  ;;  %669 = vmatpush3.bf16.msra.mxu1 %v677_v7 }
  0x18   :  { %636 = vmatprep.subr.bf16.mxu0 %v678_v8  ;;  %662 = vmatprep.subr.bf16.mxu1 %v678_v8 }
  0x1b   :  { %637 = vmatpush3.bf16.msra.mxu0 %v678_v8  ;;  %670 = vmatpush3.bf16.msra.mxu1 %v678_v8 }
  0x1c   :  { %638 = vmatprep.subr.bf16.mxu0 %v679_v9  ;;  %663 = vmatprep.subr.bf16.mxu1 %v679_v9 }
  0x1f   :  { %639 = vmatpush3.bf16.msra.mxu0 %v679_v9  ;;  %671 = vmatpush3.bf16.msra.mxu1 %v679_v9 }
  0x22   :  { %641 = vmatmul.mubr.bf16.vlgmr.msra.gmra.mxu0 %v682_v10  ;;  %649 = vmatmul.mubr.bf16.vlgmr.msra.gmra.mxu1 %v683_v11 }
  0x23   :  { %644 = vmatprep.mubr.bf16.mxu0 %v684_v12  ;;  %652 = vmatprep.mubr.bf16.mxu1 %v685_v13 }
  0x2a   :  { %645 = vmatmul.mubr.bf16.gmra.mxu0 %v686_v14  ;;  %653 = vmatmul.mubr.bf16.gmra.mxu1 %v687_v15 }
  0xe2   :  { %v642_v18 = vpop.f32.mrf.mxu0  ;;  %v650_v20 = vpop.f32.mrf.mxu1 }
  0xe3   :  { %v351_v23 = vadd.f32 %v642_v18, %v335_v16  ;;  %v359_v24 = vadd.f32 %v650_v20, %v343_v17  ;;  %v340_v16 = vld [vmem:[%s882_s2 + $0x38] sm:$0xff] }
  0xe4   :  { %v219_v25 = vpop.f32.mrf.mxu0  ;;  %v251_v26 = vpop.f32.mrf.mxu1  ;;  %v348_v17 = vld [vmem:[%s882_s2 + $0x78] sm:$0xff] }
  0xe5   :  { %v374_v27 = vmul.f32 %v775_v19, %v351_v23  ;;  %v382_v28 = vmul.f32 %v775_v19, %v359_v24  ;;  %v349_v29 = vadd.f32 %v333_v21, %v219_v25  ;;  %v357_v30 = vadd.f32 %v341_v22, %v251_v26  ;;  %v338_v24 = vld [vmem:[%s882_s2 + $0x28] sm:$0xff] }
  0xe6   :  { %v643_v34 = vpop.f32.mrf.mxu0  ;;  %v651_v35 = vpop.f32.mrf.mxu1  ;;  %v346_v26 = vld [vmem:[%s882_s2 + $0x68] sm:$0xff] }
  0xe7   :  { %v372_v36 = vmul.f32 %v775_v19, %v349_v29  ;;  %v380_v37 = vmul.f32 %v775_v19, %v357_v30  ;;  %v352_v40 = vadd.f32 %v643_v34, %v336_v31  ;;  %v360_v41 = vadd.f32 %v651_v35, %v344_v32 }
  0xe8   :  { %v222_v42 = vpop.f32.mrf.mxu0  ;;  %v254_v43 = vpop.f32.mrf.mxu1  ;;  %v397_v46 = vadd.f32 %v794_v33, %v374_v27  ;;  %v405_v47 = vadd.f32 %v794_v33, %v382_v28 }
  0xe9   :  { %v375_v48 = vmul.f32 %v775_v19, %v352_v40  ;;  %v383_v49 = vmul.f32 %v775_v19, %v360_v41  ;;  %v350_v50 = vadd.f32 %v334_v38, %v222_v42  ;;  %v358_v51 = vadd.f32 %v342_v39, %v254_v43 }
  0xea   :  { %v646_v52 = vpop.f32.mrf.mxu0  ;;  %v654_v53 = vpop.f32.mrf.mxu1  ;;  %v395_v56 = vadd.f32 %v794_v33, %v372_v36  ;;  %v403_v57 = vadd.f32 %v794_v33, %v380_v37  ;;  %v413_v2 = vmax.f32 %v397_v46, 0.0  ;;  %v421_v3 = vmax.f32 %v405_v47, 0.0 }
  0xeb   :  { %v355_v58 = vadd.f32 %v646_v52, %v339_v44  ;;  %v363_v59 = vadd.f32 %v654_v53, %v347_v45  ;;  %v398_v60 = vadd.f32 %v794_v33, %v375_v48  ;;  %v406_v61 = vadd.f32 %v794_v33, %v383_v49 }
  0xec   :  { %v373_v62 = vmul.f32 %v775_v19, %v350_v50  ;;  %v381_v63 = vmul.f32 %v775_v19, %v358_v51  ;;  %v235_v0 = vpop.f32.mrf.mxu0  ;;  %v267_v1 = vpop.f32.mrf.mxu1  ;;  %v411_v12 = vmax.f32 %v395_v56, 0.0  ;;  %v419_v13 = vmax.f32 %v403_v57, 0.0 }
  0xed   :  { %v353_v4 = vadd.f32 %v337_v54, %v235_v0  ;;  %v361_v5 = vadd.f32 %v345_v55, %v267_v1  ;;  %v414_v6 = vmax.f32 %v398_v60, 0.0  ;;  %v422_v7 = vmax.f32 %v406_v61, 0.0 }
  0xee   :  { %v396_v8 = vadd.f32 %v794_v33, %v373_v62  ;;  %v404_v9 = vadd.f32 %v794_v33, %v381_v63  ;;  %v647_v10 = vpop.f32.mrf.mxu0  ;;  %v655_v11 = vpop.f32.mrf.mxu1  ;;  %v378_v14 = vmul.f32 %v775_v19, %v355_v58  ;;  %v386_v15 = vmul.f32 %v775_v19, %v363_v59 }
  0xef   :  { %v569_v18 = vpack.c.bf16 %v414_v6, %v413_v2  ;;  %v589_v20 = vpack.c.bf16 %v422_v7, %v421_v3  ;;  %v376_v27 = vmul.f32 %v775_v19, %v353_v4  ;;  %v384_v28 = vmul.f32 %v775_v19, %v361_v5 }
  0xf0   :  { %v412_v21 = vmax.f32 %v396_v8, 0.0  ;;  %v420_v22 = vmax.f32 %v404_v9, 0.0  ;;  %v238_v23 = vpop.f32.mrf.mxu0  ;;  %v270_v25 = vpop.f32.mrf.mxu1  ;;  %v356_v31 = vadd.f32 %v647_v10, %v340_v16  ;;  %v364_v32 = vadd.f32 %v655_v11, %v348_v17 }
  0xf1   :  { %601 = vst [vmem:[%s885_s5 + $0x8] sm:$0xff] %v569_v18   ;;  %605 = vst [vmem:[%s885_s5 + $0x28] sm:$0xff] %v589_v20   ;;  %v354_v34 = vadd.f32 %v338_v24, %v238_v23  ;;  %v362_v35 = vadd.f32 %v346_v26, %v270_v25  ;;  %v401_v36 = vadd.f32 %v794_v33, %v378_v14 }
  0xf2   :  { %v564_v29 = vpack.c.bf16 %v412_v21, %v411_v12  ;;  %v584_v30 = vpack.c.bf16 %v420_v22, %v419_v13  ;;  %v409_v37 = vadd.f32 %v794_v33, %v386_v15  ;;  %v379_v38 = vmul.f32 %v775_v19, %v356_v31 }
  0xf3   :  { %v387_v39 = vmul.f32 %v775_v19, %v364_v32  ;;  %v399_v40 = vadd.f32 %v794_v33, %v376_v27  ;;  %v407_v41 = vadd.f32 %v794_v33, %v384_v28  ;;  %v377_v42 = vmul.f32 %v775_v19, %v354_v34 }
  0xf4   :  { %565 = vst [vmem:[%s885_s5] sm:$0xff] %v564_v29   ;;  %604 = vst [vmem:[%s885_s5 + $0x20] sm:$0xff] %v584_v30   ;;  %v385_v43 = vmul.f32 %v775_v19, %v362_v35  ;;  %v402_v44 = vadd.f32 %v794_v33, %v379_v38  ;;  %v417_v48 = vmax.f32 %v401_v36, 0.0  ;;  %v425_v49 = vmax.f32 %v409_v37, 0.0 }
  0xf5   :  { %v410_v45 = vadd.f32 %v794_v33, %v387_v39  ;;  %v400_v46 = vadd.f32 %v794_v33, %v377_v42  ;;  %v415_v52 = vmax.f32 %v399_v40, 0.0  ;;  %v423_v53 = vmax.f32 %v407_v41, 0.0 }
  0xf6   :  { %v408_v47 = vadd.f32 %v794_v33, %v385_v43  ;;  %v418_v50 = vmax.f32 %v402_v44, 0.0 }
  0xf7   :  { %v426_v51 = vmax.f32 %v410_v45, 0.0  ;;  %v416_v54 = vmax.f32 %v400_v46, 0.0 }
  0xf8   :  { %v424_v55 = vmax.f32 %v408_v47, 0.0  ;;  %v579_v56 = vpack.c.bf16 %v418_v50, %v417_v48 }
  0xf9   :  { %v599_v57 = vpack.c.bf16 %v426_v51, %v425_v49  ;;  %v574_v58 = vpack.c.bf16 %v416_v54, %v415_v52 }
  0xfa   :  { %v594_v19 = vpack.c.bf16 %v424_v55, %v423_v53  ;;  %603 = vst [vmem:[%s885_s5 + $0x18] sm:$0xff] %v579_v56  }
  0xfb   :  { %607 = vst [vmem:[%s885_s5 + $0x38] sm:$0xff] %v599_v57   ;;  %602 = vst [vmem:[%s885_s5 + $0x10] sm:$0xff] %v574_v58  }
  0xfc   :  { %606 = vst [vmem:[%s885_s5 + $0x30] sm:$0xff] %v594_v19  }

// kernel: graphsage_forward.7
= control target key start
LH: loop header
LB: loop body
LE: loop exit
PB: predicated region body
PF: predicated region fallthrough
CT: control target
= control target key end

     0   :  { %s551_s1 = inlined_call_operand.vmem [shape: bf16[128,128], index: 1, kind: input, shape index: {}]   ;;  %s552_s0 = inlined_call_operand.vmem [shape: bf16[128,128], index: 0, kind: input, shape index: {}]   ;;  %s553_s2 = inlined_call_operand.vmem [shape: f32[128,128], index: 2, kind: output, shape index: {}]  }
   0x1   :  { %v424_v0 = vld [vmem:[%s551_s1 + $0x38] sm:$0xff]   ;;  %v425_v1 = vld [vmem:[%s551_s1 + $0x30] sm:$0xff]   ;;  %v426_v2 = vld [vmem:[%s551_s1 + $0x28] sm:$0xff]  }
   0x2   :  { %376 = vmatprep.subr.bf16.mxu0 %v424_v0  ;;  %408 = vmatprep.subr.bf16.mxu1 %v424_v0  ;;  %v427_v3 = vld [vmem:[%s551_s1 + $0x20] sm:$0xff]   ;;  %v428_v6 = vld [vmem:[%s551_s1 + $0x18] sm:$0xff]   ;;  %v429_v7 = vld [vmem:[%s551_s1 + $0x10] sm:$0xff]  }
   0x3   :  { %377 = vmatpush3.bf16.msra.mxu0 %v424_v0  ;;  %416 = vmatpush3.bf16.msra.mxu1 %v424_v0  ;;  %v432_v4 = vld [vmem:[%s552_s0] sm:$0xff]   ;;  %v430_v8 = vld [vmem:[%s551_s1 + $0x8] sm:$0xff]   ;;  %v436_v12 = vld [vmem:[%s552_s0 + $0x10] sm:$0xff]  }
   0x4   :  { %378 = vmatprep.subr.bf16.mxu0 %v425_v1  ;;  %409 = vmatprep.subr.bf16.mxu1 %v425_v1  ;;  %v433_v5 = vld [vmem:[%s552_s0 + $0x20] sm:$0xff]   ;;  %v434_v10 = vld [vmem:[%s552_s0 + $0x8] sm:$0xff]   ;;  %v437_v13 = vld [vmem:[%s552_s0 + $0x30] sm:$0xff]  }
   0x5   :  { %392 = vmatprep.mubr.bf16.mxu0 %v432_v4  ;;  %400 = vmatprep.mubr.bf16.mxu1 %v433_v5  ;;  %v431_v9 = vld [vmem:[%s551_s1] sm:$0xff]   ;;  %v435_v11 = vld [vmem:[%s552_s0 + $0x28] sm:$0xff]   ;;  %v438_v14 = vld [vmem:[%s552_s0 + $0x18] sm:$0xff]  }
   0x6   :  { %v439_v15 = vld [vmem:[%s552_s0 + $0x38] sm:$0xff]  }
   0x7   :  { %379 = vmatpush3.bf16.msra.mxu0 %v425_v1  ;;  %417 = vmatpush3.bf16.msra.mxu1 %v425_v1 }
   0x8   :  { %380 = vmatprep.subr.bf16.mxu0 %v426_v2  ;;  %410 = vmatprep.subr.bf16.mxu1 %v426_v2 }
   0xb   :  { %381 = vmatpush3.bf16.msra.mxu0 %v426_v2  ;;  %418 = vmatpush3.bf16.msra.mxu1 %v426_v2 }
   0xc   :  { %382 = vmatprep.subr.bf16.mxu0 %v427_v3  ;;  %411 = vmatprep.subr.bf16.mxu1 %v427_v3 }
   0xf   :  { %383 = vmatpush3.bf16.msra.mxu0 %v427_v3  ;;  %419 = vmatpush3.bf16.msra.mxu1 %v427_v3 }
  0x10   :  { %384 = vmatprep.subr.bf16.mxu0 %v428_v6  ;;  %412 = vmatprep.subr.bf16.mxu1 %v428_v6 }
  0x13   :  { %385 = vmatpush3.bf16.msra.mxu0 %v428_v6  ;;  %420 = vmatpush3.bf16.msra.mxu1 %v428_v6 }
  0x14   :  { %386 = vmatprep.subr.bf16.mxu0 %v429_v7  ;;  %413 = vmatprep.subr.bf16.mxu1 %v429_v7 }
  0x17   :  { %387 = vmatpush3.bf16.msra.mxu0 %v429_v7  ;;  %421 = vmatpush3.bf16.msra.mxu1 %v429_v7 }
  0x18   :  { %388 = vmatprep.subr.bf16.mxu0 %v430_v8  ;;  %414 = vmatprep.subr.bf16.mxu1 %v430_v8 }
  0x1b   :  { %389 = vmatpush3.bf16.msra.mxu0 %v430_v8  ;;  %422 = vmatpush3.bf16.msra.mxu1 %v430_v8 }
  0x1c   :  { %390 = vmatprep.subr.bf16.mxu0 %v431_v9  ;;  %415 = vmatprep.subr.bf16.mxu1 %v431_v9 }
  0x1f   :  { %391 = vmatpush3.bf16.msra.mxu0 %v431_v9  ;;  %423 = vmatpush3.bf16.msra.mxu1 %v431_v9 }
  0x22   :  { %393 = vmatmul.mubr.bf16.vlgmr.msra.gmra.mxu0 %v434_v10  ;;  %401 = vmatmul.mubr.bf16.vlgmr.msra.gmra.mxu1 %v435_v11 }
  0x23   :  { %396 = vmatprep.mubr.bf16.mxu0 %v436_v12  ;;  %404 = vmatprep.mubr.bf16.mxu1 %v437_v13 }
  0x2a   :  { %397 = vmatmul.mubr.bf16.gmra.mxu0 %v438_v14  ;;  %405 = vmatmul.mubr.bf16.gmra.mxu1 %v439_v15 }
  0xe2   :  { %v394_v16 = vpop.f32.mrf.mxu0  ;;  %v402_v17 = vpop.f32.mrf.mxu1 }
  0xe3   :  { %326 = vst [vmem:[%s553_s2 + $0x10] sm:$0xff] %v394_v16  ;;  %334 = vst [vmem:[%s553_s2 + $0x50] sm:$0xff] %v402_v17 }
  0xe4   :  { %v210_v18 = vpop.f32.mrf.mxu0  ;;  %v242_v19 = vpop.f32.mrf.mxu1 }
  0xe5   :  { %324 = vst [vmem:[%s553_s2] sm:$0xff] %v210_v18  ;;  %332 = vst [vmem:[%s553_s2 + $0x40] sm:$0xff] %v242_v19 }
  0xe6   :  { %v395_v20 = vpop.f32.mrf.mxu0  ;;  %v403_v21 = vpop.f32.mrf.mxu1 }
  0xe7   :  { %327 = vst [vmem:[%s553_s2 + $0x18] sm:$0xff] %v395_v20  ;;  %335 = vst [vmem:[%s553_s2 + $0x58] sm:$0xff] %v403_v21 }
  0xe8   :  { %v213_v22 = vpop.f32.mrf.mxu0  ;;  %v245_v23 = vpop.f32.mrf.mxu1 }
  0xe9   :  { %325 = vst [vmem:[%s553_s2 + $0x8] sm:$0xff] %v213_v22  ;;  %333 = vst [vmem:[%s553_s2 + $0x48] sm:$0xff] %v245_v23 }
  0xea   :  { %v398_v24 = vpop.f32.mrf.mxu0  ;;  %v406_v25 = vpop.f32.mrf.mxu1 }
  0xeb   :  { %330 = vst [vmem:[%s553_s2 + $0x30] sm:$0xff] %v398_v24  ;;  %338 = vst [vmem:[%s553_s2 + $0x70] sm:$0xff] %v406_v25 }
  0xec   :  { %v226_v26 = vpop.f32.mrf.mxu0  ;;  %v258_v27 = vpop.f32.mrf.mxu1 }
  0xed   :  { %328 = vst [vmem:[%s553_s2 + $0x20] sm:$0xff] %v226_v26  ;;  %336 = vst [vmem:[%s553_s2 + $0x60] sm:$0xff] %v258_v27 }
  0xee   :  { %v399_v28 = vpop.f32.mrf.mxu0  ;;  %v407_v29 = vpop.f32.mrf.mxu1 }
  0xef   :  { %331 = vst [vmem:[%s553_s2 + $0x38] sm:$0xff] %v399_v28  ;;  %339 = vst [vmem:[%s553_s2 + $0x78] sm:$0xff] %v407_v29 }
  0xf0   :  { %v229_v30 = vpop.f32.mrf.mxu0  ;;  %v261_v31 = vpop.f32.mrf.mxu1 }
  0xf1   :  { %329 = vst [vmem:[%s553_s2 + $0x28] sm:$0xff] %v229_v30  ;;  %337 = vst [vmem:[%s553_s2 + $0x68] sm:$0xff] %v261_v31 }

// kernel: graphsage_forward.6
= control target key start
LH: loop header
LB: loop body
LE: loop exit
PB: predicated region body
PF: predicated region fallthrough
CT: control target
= control target key end

     0   :  { %s670_s1 = inlined_call_operand.vmem [shape: bf16[128,128], index: 1, kind: input, shape index: {}]   ;;  %s671_s0 = inlined_call_operand.vmem [shape: bf16[128,128], index: 0, kind: input, shape index: {}]   ;;  %s672_s2 = inlined_call_operand.vmem [shape: bf16[128,128], index: 2, kind: output, shape index: {}]  }
   0x1   :  { %v567_v0 = vld [vmem:[%s670_s1 + $0x38] sm:$0xff]   ;;  %v568_v1 = vld [vmem:[%s670_s1 + $0x30] sm:$0xff]   ;;  %v569_v2 = vld [vmem:[%s670_s1 + $0x28] sm:$0xff]  }
   0x2   :  { %519 = vmatprep.subr.bf16.mxu0 %v567_v0  ;;  %551 = vmatprep.subr.bf16.mxu1 %v567_v0  ;;  %v570_v3 = vld [vmem:[%s670_s1 + $0x20] sm:$0xff]   ;;  %v571_v6 = vld [vmem:[%s670_s1 + $0x18] sm:$0xff]   ;;  %v572_v7 = vld [vmem:[%s670_s1 + $0x10] sm:$0xff]  }
   0x3   :  { %520 = vmatpush3.bf16.msra.mxu0 %v567_v0  ;;  %559 = vmatpush3.bf16.msra.mxu1 %v567_v0  ;;  %v575_v4 = vld [vmem:[%s671_s0] sm:$0xff]   ;;  %v573_v8 = vld [vmem:[%s670_s1 + $0x8] sm:$0xff]   ;;  %v579_v12 = vld [vmem:[%s671_s0 + $0x10] sm:$0xff]  }
   0x4   :  { %521 = vmatprep.subr.bf16.mxu0 %v568_v1  ;;  %552 = vmatprep.subr.bf16.mxu1 %v568_v1  ;;  %v576_v5 = vld [vmem:[%s671_s0 + $0x20] sm:$0xff]   ;;  %v577_v10 = vld [vmem:[%s671_s0 + $0x8] sm:$0xff]   ;;  %v580_v13 = vld [vmem:[%s671_s0 + $0x30] sm:$0xff]  }
   0x5   :  { %535 = vmatprep.mubr.bf16.mxu0 %v575_v4  ;;  %543 = vmatprep.mubr.bf16.mxu1 %v576_v5  ;;  %v574_v9 = vld [vmem:[%s670_s1] sm:$0xff]   ;;  %v578_v11 = vld [vmem:[%s671_s0 + $0x28] sm:$0xff]   ;;  %v581_v14 = vld [vmem:[%s671_s0 + $0x18] sm:$0xff]  }
   0x6   :  { %v582_v15 = vld [vmem:[%s671_s0 + $0x38] sm:$0xff]  }
   0x7   :  { %522 = vmatpush3.bf16.msra.mxu0 %v568_v1  ;;  %560 = vmatpush3.bf16.msra.mxu1 %v568_v1 }
   0x8   :  { %523 = vmatprep.subr.bf16.mxu0 %v569_v2  ;;  %553 = vmatprep.subr.bf16.mxu1 %v569_v2 }
   0xb   :  { %524 = vmatpush3.bf16.msra.mxu0 %v569_v2  ;;  %561 = vmatpush3.bf16.msra.mxu1 %v569_v2 }
   0xc   :  { %525 = vmatprep.subr.bf16.mxu0 %v570_v3  ;;  %554 = vmatprep.subr.bf16.mxu1 %v570_v3 }
   0xf   :  { %526 = vmatpush3.bf16.msra.mxu0 %v570_v3  ;;  %562 = vmatpush3.bf16.msra.mxu1 %v570_v3 }
  0x10   :  { %527 = vmatprep.subr.bf16.mxu0 %v571_v6  ;;  %555 = vmatprep.subr.bf16.mxu1 %v571_v6 }
  0x13   :  { %528 = vmatpush3.bf16.msra.mxu0 %v571_v6  ;;  %563 = vmatpush3.bf16.msra.mxu1 %v571_v6 }
  0x14   :  { %529 = vmatprep.subr.bf16.mxu0 %v572_v7  ;;  %556 = vmatprep.subr.bf16.mxu1 %v572_v7 }
  0x17   :  { %530 = vmatpush3.bf16.msra.mxu0 %v572_v7  ;;  %564 = vmatpush3.bf16.msra.mxu1 %v572_v7 }
  0x18   :  { %531 = vmatprep.subr.bf16.mxu0 %v573_v8  ;;  %557 = vmatprep.subr.bf16.mxu1 %v573_v8 }
  0x1b   :  { %532 = vmatpush3.bf16.msra.mxu0 %v573_v8  ;;  %565 = vmatpush3.bf16.msra.mxu1 %v573_v8 }
  0x1c   :  { %533 = vmatprep.subr.bf16.mxu0 %v574_v9  ;;  %558 = vmatprep.subr.bf16.mxu1 %v574_v9 }
  0x1f   :  { %534 = vmatpush3.bf16.msra.mxu0 %v574_v9  ;;  %566 = vmatpush3.bf16.msra.mxu1 %v574_v9 }
  0x22   :  { %536 = vmatmul.mubr.bf16.vlgmr.msra.gmra.mxu0 %v577_v10  ;;  %544 = vmatmul.mubr.bf16.vlgmr.msra.gmra.mxu1 %v578_v11 }
  0x23   :  { %539 = vmatprep.mubr.bf16.mxu0 %v579_v12  ;;  %547 = vmatprep.mubr.bf16.mxu1 %v580_v13 }
  0x2a   :  { %540 = vmatmul.mubr.bf16.gmra.mxu0 %v581_v14  ;;  %548 = vmatmul.mubr.bf16.gmra.mxu1 %v582_v15 }
  0xe2   :  { %v537_v16 = vpop.f32.mrf.mxu0  ;;  %v545_v17 = vpop.f32.mrf.mxu1 }
  0xe4   :  { %v210_v18 = vpop.f32.mrf.mxu0  ;;  %v242_v19 = vpop.f32.mrf.mxu1 }
  0xe6   :  { %v538_v20 = vpop.f32.mrf.mxu0  ;;  %v546_v21 = vpop.f32.mrf.mxu1 }
  0xe7   :  { %v464_v22 = vpack.c.bf16 %v538_v20, %v537_v16  ;;  %v484_v23 = vpack.c.bf16 %v546_v21, %v545_v17 }
  0xe8   :  { %v213_v24 = vpop.f32.mrf.mxu0  ;;  %v245_v25 = vpop.f32.mrf.mxu1 }
  0xe9   :  { %496 = vst [vmem:[%s672_s2 + $0x8] sm:$0xff] %v464_v22   ;;  %500 = vst [vmem:[%s672_s2 + $0x28] sm:$0xff] %v484_v23   ;;  %v459_v26 = vpack.c.bf16 %v213_v24, %v210_v18  ;;  %v479_v27 = vpack.c.bf16 %v245_v25, %v242_v19 }
  0xea   :  { %v541_v28 = vpop.f32.mrf.mxu0  ;;  %v549_v29 = vpop.f32.mrf.mxu1 }
  0xeb   :  { %460 = vst [vmem:[%s672_s2] sm:$0xff] %v459_v26   ;;  %499 = vst [vmem:[%s672_s2 + $0x20] sm:$0xff] %v479_v27  }
  0xec   :  { %v226_v30 = vpop.f32.mrf.mxu0  ;;  %v258_v31 = vpop.f32.mrf.mxu1 }
  0xee   :  { %v542_v32 = vpop.f32.mrf.mxu0  ;;  %v550_v33 = vpop.f32.mrf.mxu1 }
  0xef   :  { %v474_v34 = vpack.c.bf16 %v542_v32, %v541_v28  ;;  %v494_v35 = vpack.c.bf16 %v550_v33, %v549_v29 }
  0xf0   :  { %v229_v36 = vpop.f32.mrf.mxu0  ;;  %v261_v37 = vpop.f32.mrf.mxu1 }
  0xf1   :  { %498 = vst [vmem:[%s672_s2 + $0x18] sm:$0xff] %v474_v34   ;;  %502 = vst [vmem:[%s672_s2 + $0x38] sm:$0xff] %v494_v35   ;;  %v469_v38 = vpack.c.bf16 %v229_v36, %v226_v30  ;;  %v489_v39 = vpack.c.bf16 %v261_v37, %v258_v31 }
  0xf3   :  { %497 = vst [vmem:[%s672_s2 + $0x10] sm:$0xff] %v469_v38   ;;  %501 = vst [vmem:[%s672_s2 + $0x30] sm:$0xff] %v489_v39  }

// kernel: graphsage_forward.11
= control target key start
LH: loop header
LB: loop body
LE: loop exit
PB: predicated region body
PF: predicated region fallthrough
CT: control target
= control target key end

     0   :  { %s745_s1 = inlined_call_operand.vmem [shape: bf16[128,128], index: 1, kind: input, shape index: {}]   ;;  %s746_s0 = inlined_call_operand.vmem [shape: bf16[128,128], index: 0, kind: input, shape index: {}]   ;;  %s747_s2 = inlined_call_operand.vmem [shape: f32[128,128], index: 2, kind: input, shape index: {}]   ;;  %s748_s3 = inlined_call_operand.vmem [shape: f32[1,128], index: 3, kind: input, shape index: {}]   ;;  %s749_s4 = inlined_call_operand.vmem [shape: f32[1,128], index: 4, kind: input, shape index: {}]   ;;  %s750_s5 = inlined_call_operand.vmem [shape: f32[128,128], index: 5, kind: output, shape index: {}]  }
   0x1   :  { %v513_v0 = vld [vmem:[%s745_s1 + $0x38] sm:$0xff]   ;;  %v514_v1 = vld [vmem:[%s745_s1 + $0x30] sm:$0xff]   ;;  %v515_v2 = vld [vmem:[%s745_s1 + $0x28] sm:$0xff]  }
   0x2   :  { %465 = vmatprep.subr.bf16.mxu0 %v513_v0  ;;  %497 = vmatprep.subr.bf16.mxu1 %v513_v0  ;;  %v516_v3 = vld [vmem:[%s745_s1 + $0x20] sm:$0xff]   ;;  %v517_v6 = vld [vmem:[%s745_s1 + $0x18] sm:$0xff]   ;;  %v518_v7 = vld [vmem:[%s745_s1 + $0x10] sm:$0xff]  }
   0x3   :  { %466 = vmatpush3.bf16.msra.mxu0 %v513_v0  ;;  %505 = vmatpush3.bf16.msra.mxu1 %v513_v0  ;;  %v521_v4 = vld [vmem:[%s746_s0] sm:$0xff]   ;;  %v519_v8 = vld [vmem:[%s745_s1 + $0x8] sm:$0xff]   ;;  %v525_v12 = vld [vmem:[%s746_s0 + $0x10] sm:$0xff]  }
   0x4   :  { %467 = vmatprep.subr.bf16.mxu0 %v514_v1  ;;  %498 = vmatprep.subr.bf16.mxu1 %v514_v1  ;;  %v522_v5 = vld [vmem:[%s746_s0 + $0x20] sm:$0xff]   ;;  %v523_v10 = vld [vmem:[%s746_s0 + $0x8] sm:$0xff]   ;;  %v526_v13 = vld [vmem:[%s746_s0 + $0x30] sm:$0xff]  }
   0x5   :  { %481 = vmatprep.mubr.bf16.mxu0 %v521_v4  ;;  %489 = vmatprep.mubr.bf16.mxu1 %v522_v5  ;;  %v520_v9 = vld [vmem:[%s745_s1] sm:$0xff]   ;;  %v524_v11 = vld [vmem:[%s746_s0 + $0x28] sm:$0xff]   ;;  %v527_v14 = vld [vmem:[%s746_s0 + $0x18] sm:$0xff]  }
   0x6   :  { %v528_v15 = vld [vmem:[%s746_s0 + $0x38] sm:$0xff]   ;;  %v335_v16 = vld [vmem:[%s747_s2 + $0x10] sm:$0xff]  ;;  %v616_v19 = vld [vmem:[%s748_s3] ss:$0 sm:$0xff] }
   0x7   :  { %468 = vmatpush3.bf16.msra.mxu0 %v514_v1  ;;  %506 = vmatpush3.bf16.msra.mxu1 %v514_v1  ;;  %v343_v17 = vld [vmem:[%s747_s2 + $0x50] sm:$0xff]  ;;  %v333_v21 = vld [vmem:[%s747_s2] sm:$0xff]  ;;  %v336_v32 = vld [vmem:[%s747_s2 + $0x18] sm:$0xff] }
   0x8   :  { %469 = vmatprep.subr.bf16.mxu0 %v515_v2  ;;  %499 = vmatprep.subr.bf16.mxu1 %v515_v2  ;;  %v341_v22 = vld [vmem:[%s747_s2 + $0x40] sm:$0xff]  ;;  %v344_v33 = vld [vmem:[%s747_s2 + $0x58] sm:$0xff]  ;;  %v334_v36 = vld [vmem:[%s747_s2 + $0x8] sm:$0xff] }
   0x9   :  { %v627_v25 = vld [vmem:[%s749_s4] ss:$0 sm:$0xff]  ;;  %v342_v37 = vld [vmem:[%s747_s2 + $0x48] sm:$0xff]  ;;  %v339_v46 = vld [vmem:[%s747_s2 + $0x30] sm:$0xff] }
   0xa   :  { %v347_v47 = vld [vmem:[%s747_s2 + $0x70] sm:$0xff]  ;;  %v337_v60 = vld [vmem:[%s747_s2 + $0x20] sm:$0xff] }
   0xb   :  { %470 = vmatpush3.bf16.msra.mxu0 %v515_v2  ;;  %507 = vmatpush3.bf16.msra.mxu1 %v515_v2  ;;  %v345_v61 = vld [vmem:[%s747_s2 + $0x60] sm:$0xff]  ;;  %v340_v2 = vld [vmem:[%s747_s2 + $0x38] sm:$0xff] }
   0xc   :  { %471 = vmatprep.subr.bf16.mxu0 %v516_v3  ;;  %500 = vmatprep.subr.bf16.mxu1 %v516_v3 }
   0xf   :  { %472 = vmatpush3.bf16.msra.mxu0 %v516_v3  ;;  %508 = vmatpush3.bf16.msra.mxu1 %v516_v3  ;;  %v348_v3 = vld [vmem:[%s747_s2 + $0x78] sm:$0xff] }
  0x10   :  { %473 = vmatprep.subr.bf16.mxu0 %v517_v6  ;;  %501 = vmatprep.subr.bf16.mxu1 %v517_v6 }
  0x13   :  { %474 = vmatpush3.bf16.msra.mxu0 %v517_v6  ;;  %509 = vmatpush3.bf16.msra.mxu1 %v517_v6 }
  0x14   :  { %475 = vmatprep.subr.bf16.mxu0 %v518_v7  ;;  %502 = vmatprep.subr.bf16.mxu1 %v518_v7 }
  0x17   :  { %476 = vmatpush3.bf16.msra.mxu0 %v518_v7  ;;  %510 = vmatpush3.bf16.msra.mxu1 %v518_v7 }
  0x18   :  { %477 = vmatprep.subr.bf16.mxu0 %v519_v8  ;;  %503 = vmatprep.subr.bf16.mxu1 %v519_v8 }
  0x1b   :  { %478 = vmatpush3.bf16.msra.mxu0 %v519_v8  ;;  %511 = vmatpush3.bf16.msra.mxu1 %v519_v8 }
  0x1c   :  { %479 = vmatprep.subr.bf16.mxu0 %v520_v9  ;;  %504 = vmatprep.subr.bf16.mxu1 %v520_v9 }
  0x1f   :  { %480 = vmatpush3.bf16.msra.mxu0 %v520_v9  ;;  %512 = vmatpush3.bf16.msra.mxu1 %v520_v9 }
  0x22   :  { %482 = vmatmul.mubr.bf16.vlgmr.msra.gmra.mxu0 %v523_v10  ;;  %490 = vmatmul.mubr.bf16.vlgmr.msra.gmra.mxu1 %v524_v11 }
  0x23   :  { %485 = vmatprep.mubr.bf16.mxu0 %v525_v12  ;;  %493 = vmatprep.mubr.bf16.mxu1 %v526_v13  ;;  %v338_v12 = vld [vmem:[%s747_s2 + $0x28] sm:$0xff] }
  0x24   :  { %v346_v13 = vld [vmem:[%s747_s2 + $0x68] sm:$0xff] }
  0x2a   :  { %486 = vmatmul.mubr.bf16.gmra.mxu0 %v527_v14  ;;  %494 = vmatmul.mubr.bf16.gmra.mxu1 %v528_v15 }
  0xe2   :  { %v483_v18 = vpop.f32.mrf.mxu0  ;;  %v491_v20 = vpop.f32.mrf.mxu1 }
  0xe3   :  { %v351_v23 = vadd.f32 %v483_v18, %v335_v16  ;;  %v359_v24 = vadd.f32 %v491_v20, %v343_v17 }
  0xe4   :  { %v219_v26 = vpop.f32.mrf.mxu0  ;;  %v251_v27 = vpop.f32.mrf.mxu1 }
  0xe5   :  { %v374_v28 = vmul.f32 %v616_v19, %v351_v23  ;;  %v382_v29 = vmul.f32 %v616_v19, %v359_v24  ;;  %v349_v30 = vadd.f32 %v333_v21, %v219_v26  ;;  %v357_v31 = vadd.f32 %v341_v22, %v251_v27 }
  0xe6   :  { %v484_v34 = vpop.f32.mrf.mxu0  ;;  %v492_v35 = vpop.f32.mrf.mxu1 }
  0xe7   :  { %v397_v38 = vadd.f32 %v627_v25, %v374_v28  ;;  %v405_v39 = vadd.f32 %v627_v25, %v382_v29  ;;  %v372_v40 = vmul.f32 %v616_v19, %v349_v30  ;;  %v380_v41 = vmul.f32 %v616_v19, %v357_v31 }
  0xe8   :  { %v352_v42 = vadd.f32 %v484_v34, %v336_v32  ;;  %v360_v43 = vadd.f32 %v492_v35, %v344_v33  ;;  %v222_v44 = vpop.f32.mrf.mxu0  ;;  %v254_v45 = vpop.f32.mrf.mxu1 }
  0xe9   :  { %413 = vst [vmem:[%s750_s5 + $0x10] sm:$0xff] %v397_v38  ;;  %421 = vst [vmem:[%s750_s5 + $0x50] sm:$0xff] %v405_v39  ;;  %v395_v48 = vadd.f32 %v627_v25, %v372_v40  ;;  %v403_v49 = vadd.f32 %v627_v25, %v380_v41  ;;  %v350_v50 = vadd.f32 %v334_v36, %v222_v44 }
  0xea   :  { %v358_v51 = vadd.f32 %v342_v37, %v254_v45  ;;  %v375_v52 = vmul.f32 %v616_v19, %v352_v42  ;;  %v383_v53 = vmul.f32 %v616_v19, %v360_v43  ;;  %v487_v54 = vpop.f32.mrf.mxu0  ;;  %v495_v55 = vpop.f32.mrf.mxu1 }
  0xeb   :  { %411 = vst [vmem:[%s750_s5] sm:$0xff] %v395_v48  ;;  %419 = vst [vmem:[%s750_s5 + $0x40] sm:$0xff] %v403_v49  ;;  %v373_v56 = vmul.f32 %v616_v19, %v350_v50  ;;  %v355_v58 = vadd.f32 %v487_v54, %v339_v46  ;;  %v363_v59 = vadd.f32 %v495_v55, %v347_v47 }
  0xec   :  { %v381_v57 = vmul.f32 %v616_v19, %v358_v51  ;;  %v398_v62 = vadd.f32 %v627_v25, %v375_v52  ;;  %v406_v63 = vadd.f32 %v627_v25, %v383_v53  ;;  %v235_v0 = vpop.f32.mrf.mxu0  ;;  %v267_v1 = vpop.f32.mrf.mxu1 }
  0xed   :  { %v396_v4 = vadd.f32 %v627_v25, %v373_v56  ;;  %v378_v6 = vmul.f32 %v616_v19, %v355_v58  ;;  %v386_v7 = vmul.f32 %v616_v19, %v363_v59  ;;  %v353_v8 = vadd.f32 %v337_v60, %v235_v0 }
  0xee   :  { %v404_v5 = vadd.f32 %v627_v25, %v381_v57  ;;  %414 = vst [vmem:[%s750_s5 + $0x18] sm:$0xff] %v398_v62  ;;  %422 = vst [vmem:[%s750_s5 + $0x58] sm:$0xff] %v406_v63  ;;  %v361_v9 = vadd.f32 %v345_v61, %v267_v1  ;;  %v488_v10 = vpop.f32.mrf.mxu0  ;;  %v496_v11 = vpop.f32.mrf.mxu1 }
  0xef   :  { %412 = vst [vmem:[%s750_s5 + $0x8] sm:$0xff] %v396_v4  ;;  %v401_v14 = vadd.f32 %v627_v25, %v378_v6  ;;  %v409_v15 = vadd.f32 %v627_v25, %v386_v7  ;;  %v356_v16 = vadd.f32 %v488_v10, %v340_v2  ;;  %v364_v17 = vadd.f32 %v496_v11, %v348_v3 }
  0xf0   :  { %420 = vst [vmem:[%s750_s5 + $0x48] sm:$0xff] %v404_v5  ;;  %v376_v18 = vmul.f32 %v616_v19, %v353_v8  ;;  %v384_v20 = vmul.f32 %v616_v19, %v361_v9  ;;  %v238_v21 = vpop.f32.mrf.mxu0  ;;  %v270_v22 = vpop.f32.mrf.mxu1 }
  0xf1   :  { %417 = vst [vmem:[%s750_s5 + $0x30] sm:$0xff] %v401_v14  ;;  %425 = vst [vmem:[%s750_s5 + $0x70] sm:$0xff] %v409_v15  ;;  %v379_v23 = vmul.f32 %v616_v19, %v356_v16  ;;  %v387_v24 = vmul.f32 %v616_v19, %v364_v17  ;;  %v354_v26 = vadd.f32 %v338_v12, %v238_v21 }
  0xf2   :  { %v362_v27 = vadd.f32 %v346_v13, %v270_v22  ;;  %v399_v28 = vadd.f32 %v627_v25, %v376_v18  ;;  %v407_v29 = vadd.f32 %v627_v25, %v384_v20 }
  0xf3   :  { %v402_v30 = vadd.f32 %v627_v25, %v379_v23  ;;  %v410_v31 = vadd.f32 %v627_v25, %v387_v24  ;;  %v377_v32 = vmul.f32 %v616_v19, %v354_v26 }
  0xf4   :  { %v385_v33 = vmul.f32 %v616_v19, %v362_v27  ;;  %415 = vst [vmem:[%s750_s5 + $0x20] sm:$0xff] %v399_v28  ;;  %423 = vst [vmem:[%s750_s5 + $0x60] sm:$0xff] %v407_v29 }
  0xf5   :  { %418 = vst [vmem:[%s750_s5 + $0x38] sm:$0xff] %v402_v30  ;;  %426 = vst [vmem:[%s750_s5 + $0x78] sm:$0xff] %v410_v31  ;;  %v400_v34 = vadd.f32 %v627_v25, %v377_v32 }
  0xf6   :  { %v408_v19 = vadd.f32 %v627_v25, %v385_v33 }
  0xf7   :  { %416 = vst [vmem:[%s750_s5 + $0x28] sm:$0xff] %v400_v34 }
  0xf8   :  { %424 = vst [vmem:[%s750_s5 + $0x68] sm:$0xff] %v408_v19 }

</bundles_post_ra>
